<compile_context>
chip_gen: v6e
topology: v6e:2x2x1
jax: 0.10.0
libtpu: 0.0.40
codegen_flags: <defaults>
</compile_context>

<pallas_src>
import jax
import jax.numpy as jnp
from jax.experimental import pallas as pl
from jax.experimental.pallas import tpu as pltpu


# ------------------------- Circuit marker "modules" ------------------------ #

class Identity:
    def __call__(self, x):
        return x


class EndBlock:
    def __init__(self, name):
        self.name = name

    def __call__(self, x):
        return x


class GetInput:
    """Fetch a saved activation and combine it with the current one.

    `op` and `transform` must be traceable array ops (default: jnp.add /
    Identity) — they are applied INSIDE the fused Pallas kernel.
    """

    def __init__(self, name, op=jnp.add, transform=None):
        self.name = name
        self.op = op
        self.transform = transform if transform is not None else Identity()

    def __call__(self, x):
        return x


class SaveInput:
    def __init__(self, name, transform=None):
        self.name = name
        self.transform = transform if transform is not None else Identity()

    def __call__(self, x):
        return x


class StartBlock:
    def __init__(self, name, num_repeats=1):
        self.name = name
        self.num_repeats = num_repeats
        if num_repeats < 1:
            raise ValueError(f"num_repeats must be >= 1, got {num_repeats}")

    def __call__(self, x):
        return x


# --------------------------- Parametrized layers --------------------------- #

class PallasLinear:
    """Equivalent of nn.Linear: y = x @ W.T + b (weights stored pre-transposed
    as (in_features, out_features)). Parameters are consumed by the fused
    circuit kernel; __call__ is a plain-JAX fallback."""

    def __init__(self, key, in_features, out_features):
        kw, kb = jax.random.split(key)
        bound = 1.0 / jnp.sqrt(in_features)
        self.w = jax.random.uniform(
            kw, (in_features, out_features), jnp.float32, -bound, bound)
        self.b = jax.random.uniform(
            kb, (1, out_features), jnp.float32, -bound, bound)

    def __call__(self, x):
        return (jnp.dot(x.astype(jnp.bfloat16), self.w.astype(jnp.bfloat16),
                        preferred_element_type=jnp.float32) + self.b)


class PallasReLU:
    def __call__(self, x):
        return jnp.maximum(x, 0.0)


# ----------------------- Fused traced forward replay ----------------------- #

def _replay_layers(expanded_layers, x, get_w, get_b):
    """Replay the expanded layer list on traced arrays (used both inside the
    fused Pallas kernel body and for shape inference / reference).

    get_w(layer_id) -> bf16 (in, out) weight; get_b(layer_id) -> f32 (1, out).
    """
    skips = {}
    for layer in expanded_layers:
        if isinstance(layer, PallasLinear):
            w = get_w(id(layer))
            b = get_b(id(layer))
            # bf16 operands, f32 MXU accumulation; f32 bias-add epilogue (VPU).
            x = jnp.dot(x.astype(jnp.bfloat16), w,
                        preferred_element_type=jnp.float32) + b
        elif isinstance(layer, PallasReLU):
            x = jnp.maximum(x, 0.0)
        elif isinstance(layer, SaveInput):
            skips[layer.name] = layer.transform(x)
        elif isinstance(layer, GetInput):
            if layer.name not in skips:
                raise RuntimeError(
                    f"Skip connection '{layer.name}' not found. "
                    f"Available: {list(skips.keys())}")
            x = layer.op(x, layer.transform(skips[layer.name]))
        else:
            x = layer(x)
    return x


def _make_fused_kernel(expanded_layers, param_index, n_w_packs, n_b_packs):
    def kernel(*refs):
        x_ref = refs[0]
        w_refs = refs[1:1 + n_w_packs]
        b_refs = refs[1 + n_w_packs:1 + n_w_packs + n_b_packs]
        o_ref = refs[-1]

        # No in-register weight caching: read the VMEM ref at each use site
        # (static leading index into the packed stack) and let Mosaic handle
        # register pressure / CSE.
        def get_w(lid):
            g, s = param_index[lid][0]
            return w_refs[g][s]                       # (in, out) bf16

        def get_b(lid):
            g, s = param_index[lid][1]
            return b_refs[g][pl.ds(s, 1), :]          # (1, out) f32

        y = _replay_layers(expanded_layers,
                           x_ref[...].astype(jnp.float32), get_w, get_b)
        o_ref[...] = y.astype(o_ref.dtype)

    return kernel


# ------------------------------ Circuit logic ------------------------------ #

class Circuit:
    """JAX/Pallas port of torch_circuit.Circuit forward semantics.

    The full expanded-layer forward runs inside a single fused pallas_call.
    """

    def __init__(self, *layers):
        self.original_layers = layers
        self.expanded_layers = []
        self._expand_repeaters()

    # ---- repeat-block expansion (identical semantics to the torch version) ----
    def _expand_repeaters(self):
        i = 0
        while i < len(self.original_layers):
            layer = self.original_layers[i]
            if isinstance(layer, StartBlock):
                end_idx = self._find_matching_end_block(i, layer.name)
                if end_idx == -1:
                    raise ValueError(
                        f"No matching EndBlock found for StartBlock '{layer.name}'")
                repeat_layers = list(self.original_layers[i + 1:end_idx])
                for repeat_idx in range(layer.num_repeats):
                    for rl in repeat_layers:
                        if isinstance(rl, (SaveInput, GetInput)):
                            unique_name = f"{rl.name}_repeat_{repeat_idx}"
                            if isinstance(rl, SaveInput):
                                self.expanded_layers.append(
                                    SaveInput(unique_name, rl.transform))
                            else:
                                self.expanded_layers.append(
                                    GetInput(unique_name, rl.op, rl.transform))
                        else:
                            # Same object reused across repeats -> its
                            # parameters are passed to the kernel only once.
                            self.expanded_layers.append(rl)
                i = end_idx + 1
            elif isinstance(layer, EndBlock):
                raise ValueError(
                    f"EndBlock '{layer.name}' without matching StartBlock")
            else:
                self.expanded_layers.append(layer)
                i += 1

    def _find_matching_end_block(self, start_idx, name):
        nesting_level = 0
        for i in range(start_idx + 1, len(self.original_layers)):
            layer = self.original_layers[i]
            if isinstance(layer, StartBlock):
                nesting_level += 1
            elif isinstance(layer, EndBlock):
                if nesting_level == 0 and layer.name == name:
                    return i
                nesting_level -= 1
        return -1

    # ---- packed parameter gathering (deduplicated by layer identity) ----
    def _collect_packed_params(self):
        w_groups = {}   # weight shape -> list of f32 (in, out) arrays
        b_groups = {}   # out_features -> list of f32 (1, out) arrays
        param_index = {}  # id(layer) -> ((w_group, w_slot), (b_group, b_slot))
        for layer in self.expanded_layers:
            if isinstance(layer, PallasLinear) and id(layer) not in param_index:
                wshape = tuple(layer.w.shape)
                wlist = w_groups.setdefault(wshape, [])
                wg = list(w_groups.keys()).index(wshape)
                ws = len(wlist)
                wlist.append(layer.w)

                bdim = int(layer.b.shape[1])
                blist = b_groups.setdefault(bdim, [])
                bg = list(b_groups.keys()).index(bdim)
                bs = len(blist)
                blist.append(layer.b)

                param_index[id(layer)] = ((wg, ws), (bg, bs))

        # Weights packed & pre-cast to bf16 once (halves DMA + VMEM residency).
        w_packed = [jnp.stack(w_groups[k]).astype(jnp.bfloat16)
                    for k in w_groups]
        # Biases stay f32 (epilogue math stays f32 on the VPU).
        b_packed = [jnp.concatenate(b_groups[k], axis=0) for k in b_groups]
        return w_packed, b_packed, param_index

    @staticmethod
    def _vmem_budget_bytes(tile_b, feat_dims, w_packed, b_packed):
        param_bytes = sum(int(a.size) * a.dtype.itemsize
                          for a in list(w_packed) + list(b_packed))
        act_bytes = tile_b * max(feat_dims) * 4
        # 2x params (pipeline bookkeeping headroom) + double-buffered in/out
        # tiles + live intermediates + fixed slack.
        budget = 2 * param_bytes + 8 * act_bytes + (4 << 20)
        return int(min(max(budget, 16 << 20), 100 << 20))

    # ---- fused forward ----
    def __call__(self, x):
        w_packed, b_packed, param_index = self._collect_packed_params()

        def arr_get_w(lid, wps):
            g, s = param_index[lid][0]
            return wps[g][s]

        def arr_get_b(lid, bps):
            g, s = param_index[lid][1]
            return bps[g][s:s + 1, :]

        # Output shape via shape-only trace of the same replay.
        out_struct = jax.eval_shape(
            lambda xx, wps, bps: _replay_layers(
                self.expanded_layers, xx,
                lambda lid: arr_get_w(lid, wps),
                lambda lid: arr_get_b(lid, bps)),
            x, w_packed, b_packed)

        B, in_f = x.shape
        out_f = out_struct.shape[1]

        # Capped batch tile: round B up to a sublane multiple, cap at 128 f32
        # rows. Pallas pads any partial last block (fine for these ops).
        tile_b = min(((B + 7) // 8) * 8, 128)
        grid = (pl.cdiv(B, tile_b),)

        in_specs = [pl.BlockSpec((tile_b, in_f), lambda i: (i, 0))]
        for wp in w_packed:
            # Full-array, grid-invariant block: packed weights stay VMEM-resident.
            in_specs.append(pl.BlockSpec(wp.shape, lambda i: (0, 0, 0)))
        for bp in b_packed:
            in_specs.append(pl.BlockSpec(bp.shape, lambda i: (0, 0)))
        out_spec = pl.BlockSpec((tile_b, out_f), lambda i: (i, 0))

        feat_dims = [in_f, out_f] + [int(wp.shape[-1]) for wp in w_packed]
        vmem_limit = self._vmem_budget_bytes(tile_b, feat_dims,
                                             w_packed, b_packed)

        kernel = _make_fused_kernel(self.expanded_layers, param_index,
                                    len(w_packed), len(b_packed))

        return pl.pallas_call(
            kernel,
            out_shape=jax.ShapeDtypeStruct((B, out_f), x.dtype),
            grid=grid,
            in_specs=in_specs,
            out_specs=out_spec,
            compiler_params=pltpu.CompilerParams(
                dimension_semantics=("parallel",),
                vmem_limit_bytes=vmem_limit),
        )(x, *w_packed, *b_packed)


# ----------------------------- Reference (JAX) ----------------------------- #

def reference_forward(x, circuit):
    """Pure-JAX reference replaying the same expanded-layer semantics
    (same bf16-operand / f32-accumulate matmul path as the kernel)."""
    w_packed, b_packed, param_index = circuit._collect_packed_params()

    def get_w(lid):
        g, s = param_index[lid][0]
        return w_packed[g][s]

    def get_b(lid):
        g, s = param_index[lid][1]
        return b_packed[g][s:s + 1, :]

    return _replay_layers(circuit.expanded_layers, x, get_w, get_b)


# ---------------------------------- Main ----------------------------------- #

if __name__ == "__main__":
    key = jax.random.PRNGKey(0)
    k_in, k1, k3, kx = jax.random.split(key, 4)

    # Lane-dense feature dims (multiples of 128); small batch for the demo.
    BATCH, IN_F, HID = 8, 128, 128

    # Circuit: stem linear, then a residual block repeated 2x, then head linear.
    circuit = Circuit(
        PallasLinear(k_in, IN_F, HID),
        StartBlock("res", num_repeats=2),
        SaveInput("skip"),
        PallasLinear(k1, HID, HID),
        PallasReLU(),
        GetInput("skip"),            # op=jnp.add fused inside the kernel
        EndBlock("res"),
        PallasLinear(k3, HID, HID),
    )

    x = jax.random.normal(kx, (BATCH, IN_F), jnp.float32)

    out = jax.block_until_ready(circuit(x))

    ref = reference_forward(x, circuit)
    assert out.shape == (BATCH, HID), out.shape
    assert out.dtype == x.dtype, out.dtype
    assert jnp.allclose(out, ref, atol=1e-3, rtol=1e-3), "mismatch vs reference"

    print("KERNEL_OK")
</pallas_src>

<mosaic_0001>
module attributes {stable_mosaic.version = 11 : i64} {
  func.func @kernel(%arg0: i32, %arg1: memref<8x128xf32, #tpu.memory_space<vmem>>, %arg2: memref<3x128x128xbf16, #tpu.memory_space<vmem>>, %arg3: memref<3x128xf32, #tpu.memory_space<vmem>>, %arg4: memref<8x128xf32, #tpu.memory_space<vmem>>) attributes {dimension_semantics = [#tpu.dimension_semantics<parallel>], iteration_bounds = array<i64: 1>, scalar_prefetch = 0 : i64, scratch_operands = 0 : i64, tpu.core_type = #tpu.core_type<tc>, window_params = [{transform_indices = @transform_0, window_bounds = array<i64: 8, 128>}, {pipeline_mode = #tpu.pipeline_mode<synchronous>, transform_indices = @transform_1, window_bounds = array<i64: 3, 128, 128>}, {pipeline_mode = #tpu.pipeline_mode<synchronous>, transform_indices = @transform_2, window_bounds = array<i64: 3, 128>}, {transform_indices = @transform_3, window_bounds = array<i64: 8, 128>}]} {
    %c0 = arith.constant 0 : index
    %c0_0 = arith.constant 0 : index
    %0 = vector.load %arg1[%c0, %c0_0] : memref<8x128xf32, #tpu.memory_space<vmem>>, vector<8x128xf32>
    %c0_1 = arith.constant 0 : index
    %c0_2 = arith.constant 0 : index
    %c0_3 = arith.constant 0 : index
    %1 = vector.load %arg2[%c0_1, %c0_2, %c0_3] : memref<3x128x128xbf16, #tpu.memory_space<vmem>>, vector<1x128x128xbf16>
    %2 = vector.shape_cast %1 : vector<1x128x128xbf16> to vector<128x128xbf16>
    %c0_4 = arith.constant 0 : index
    %c0_5 = arith.constant 0 : index
    %3 = vector.load %arg3[%c0_4, %c0_5] : memref<3x128xf32, #tpu.memory_space<vmem>>, vector<1x128xf32>
    %4 = arith.truncf %0 : vector<8x128xf32> to vector<8x128xbf16>
    %cst = arith.constant dense<0.000000e+00> : vector<8x128xf32>
    %5 = tpu.matmul %4, %2, %cst {dimension_numbers = #tpu.dot_dimension_numbers<[1], [0], [0], [1], [0, 0, 1, 1], [], []>} : vector<8x128xbf16>, vector<128x128xbf16>, vector<8x128xf32> -> vector<8x128xf32>
    %6 = vector.broadcast %3 : vector<1x128xf32> to vector<8x128xf32>
    %7 = arith.addf %5, %6 : vector<8x128xf32>
    %c1 = arith.constant 1 : index
    %c0_6 = arith.constant 0 : index
    %c0_7 = arith.constant 0 : index
    %8 = vector.load %arg2[%c1, %c0_6, %c0_7] : memref<3x128x128xbf16, #tpu.memory_space<vmem>>, vector<1x128x128xbf16>
    %9 = vector.shape_cast %8 : vector<1x128x128xbf16> to vector<128x128xbf16>
    %c1_8 = arith.constant 1 : index
    %c0_9 = arith.constant 0 : index
    %10 = vector.load %arg3[%c1_8, %c0_9] : memref<3x128xf32, #tpu.memory_space<vmem>>, vector<1x128xf32>
    %11 = arith.truncf %7 : vector<8x128xf32> to vector<8x128xbf16>
    %cst_10 = arith.constant dense<0.000000e+00> : vector<8x128xf32>
    %12 = tpu.matmul %11, %9, %cst_10 {dimension_numbers = #tpu.dot_dimension_numbers<[1], [0], [0], [1], [0, 0, 1, 1], [], []>} : vector<8x128xbf16>, vector<128x128xbf16>, vector<8x128xf32> -> vector<8x128xf32>
    %13 = vector.broadcast %10 : vector<1x128xf32> to vector<8x128xf32>
    %14 = arith.addf %12, %13 : vector<8x128xf32>
    %cst_11 = arith.constant 0.000000e+00 : f32
    %15 = vector.broadcast %cst_11 : f32 to vector<8x128xf32>
    %16 = arith.maximumf %14, %15 : vector<8x128xf32>
    %17 = arith.addf %16, %7 : vector<8x128xf32>
    %c1_12 = arith.constant 1 : index
    %c0_13 = arith.constant 0 : index
    %c0_14 = arith.constant 0 : index
    %18 = vector.load %arg2[%c1_12, %c0_13, %c0_14] : memref<3x128x128xbf16, #tpu.memory_space<vmem>>, vector<1x128x128xbf16>
    %19 = vector.shape_cast %18 : vector<1x128x128xbf16> to vector<128x128xbf16>
    %c1_15 = arith.constant 1 : index
    %c0_16 = arith.constant 0 : index
    %20 = vector.load %arg3[%c1_15, %c0_16] : memref<3x128xf32, #tpu.memory_space<vmem>>, vector<1x128xf32>
    %21 = arith.truncf %17 : vector<8x128xf32> to vector<8x128xbf16>
    %cst_17 = arith.constant dense<0.000000e+00> : vector<8x128xf32>
    %22 = tpu.matmul %21, %19, %cst_17 {dimension_numbers = #tpu.dot_dimension_numbers<[1], [0], [0], [1], [0, 0, 1, 1], [], []>} : vector<8x128xbf16>, vector<128x128xbf16>, vector<8x128xf32> -> vector<8x128xf32>
    %23 = vector.broadcast %20 : vector<1x128xf32> to vector<8x128xf32>
    %24 = arith.addf %22, %23 : vector<8x128xf32>
    %cst_18 = arith.constant 0.000000e+00 : f32
    %25 = vector.broadcast %cst_18 : f32 to vector<8x128xf32>
    %26 = arith.maximumf %24, %25 : vector<8x128xf32>
    %27 = arith.addf %26, %17 : vector<8x128xf32>
    %c2 = arith.constant 2 : index
    %c0_19 = arith.constant 0 : index
    %c0_20 = arith.constant 0 : index
    %28 = vector.load %arg2[%c2, %c0_19, %c0_20] : memref<3x128x128xbf16, #tpu.memory_space<vmem>>, vector<1x128x128xbf16>
    %29 = vector.shape_cast %28 : vector<1x128x128xbf16> to vector<128x128xbf16>
    %c2_21 = arith.constant 2 : index
    %c0_22 = arith.constant 0 : index
    %30 = vector.load %arg3[%c2_21, %c0_22] : memref<3x128xf32, #tpu.memory_space<vmem>>, vector<1x128xf32>
    %31 = arith.truncf %27 : vector<8x128xf32> to vector<8x128xbf16>
    %cst_23 = arith.constant dense<0.000000e+00> : vector<8x128xf32>
    %32 = tpu.matmul %31, %29, %cst_23 {dimension_numbers = #tpu.dot_dimension_numbers<[1], [0], [0], [1], [0, 0, 1, 1], [], []>} : vector<8x128xbf16>, vector<128x128xbf16>, vector<8x128xf32> -> vector<8x128xf32>
    %33 = vector.broadcast %30 : vector<1x128xf32> to vector<8x128xf32>
    %34 = arith.addf %32, %33 : vector<8x128xf32>
    %c0_24 = arith.constant 0 : index
    %c0_25 = arith.constant 0 : index
    %35 = vector.load %arg4[%c0_24, %c0_25] : memref<8x128xf32, #tpu.memory_space<vmem>>, vector<8x128xf32>
    tpu.vector_store %arg4[%c0_24, %c0_25], %34 {strides = array<i32>} : memref<8x128xf32, #tpu.memory_space<vmem>>, vector<8x128xf32>,
    return
  }
  func.func @transform_0(%arg0: i32) -> (i32, i32) {
    %c0_i32 = arith.constant 0 : i32
    %c0_i32_0 = arith.constant 0 : i32
    return %arg0, %c0_i32 : i32, i32
  }
  func.func @transform_1(%arg0: i32) -> (i32, i32, i32) {
    %c0_i32 = arith.constant 0 : i32
    %c0_i32_0 = arith.constant 0 : i32
    %c0_i32_1 = arith.constant 0 : i32
    %c0_i32_2 = arith.constant 0 : i32
    return %c0_i32, %c0_i32_0, %c0_i32_1 : i32, i32, i32
  }
  func.func @transform_2(%arg0: i32) -> (i32, i32) {
    %c0_i32 = arith.constant 0 : i32
    %c0_i32_0 = arith.constant 0 : i32
    %c0_i32_1 = arith.constant 0 : i32
    return %c0_i32, %c0_i32_0 : i32, i32
  }
  func.func @transform_3(%arg0: i32) -> (i32, i32) {
    %c0_i32 = arith.constant 0 : i32
    %c0_i32_0 = arith.constant 0 : i32
    return %arg0, %c0_i32 : i32, i32
  }
}

</mosaic_0001>

<bundles_post_ra>
// kernel: tpu_custom_call.1
= control target key start
LH: loop header
LB: loop body
LE: loop exit
PB: predicated region body
PF: predicated region fallthrough
CT: control target
= control target key end

     0   :  { %8 = vsyncpa [#allocation3], 0  ;;  %s789_s0 = inlined_call_operand.hbm [shape: f32[8,128], index: 0, kind: input, shape index: {}]   ;;  %s790_s1 = inlined_call_operand.hbm [shape: bf16[3,128,128], index: 1, kind: input, shape index: {}]   ;;  %s791_s2 = inlined_call_operand.hbm [shape: f32[3,128], index: 2, kind: input, shape index: {}]   ;;  %s792_s3 = inlined_call_operand.hbm [shape: f32[8,128], index: 3, kind: output, shape index: {}]  }
   0x1   :  { %9 = vsyncpa [#allocation6], 0 }
   0x2   :  { %10 = vsyncpa [#allocation4], 0  ;;  %s709_s12 = smov [#allocation5]  }
   0x3   :  { %s26_s13 = sshll.u32 %s709_s12, 4  ;;  %s27_s13 = int_to_ptr.vmem [resolvable:$true] %s26_s13 }
   0x4   :  { %s631_s14 = scalar_lea.vmem %s27_s13, 3072  ;;  %p636_p1 = scmp.lt.s32.totalorder %s27_s13, %s27_s13 }
   0x5   :  { %p632_p0 = scmp.ne.s32.totalorder %s27_s13, %s631_s14  ;;  %p637_p2 = scmp.lt.s32.totalorder %s631_s14, %s631_s14 }
   0x7   :  { %p638_p3 = por %p637_p2, %p636_p1 }
   0x9   :  { %p639_p4 = pnand %p638_p3, %p632_p0 }
   0xb   :  { %642 = shalt.err (!%p639_p4)
}
   0xc   :  { %s710_s15 = smov 64   ;;  %s711_s16 = smov 4  }
   0xd   :  { %32 = dma.hbm_to_vmem [thread:$0]  %s790_s1, 3072, %s27_s13, [#allocation6], %s710_s15, %s710_s15, %s711_s16  }
   0xe   :  { %s712_s19 = smov [#allocation2]   ;;  %s713_s21 = smov [#allocation7]  }
   0xf   :  { %s17_s20 = sshll.u32 %s712_s19, 4  ;;  %s39_s22 = sshll.u32 %s713_s21, 4  ;;  %s18_s20 = int_to_ptr.vmem [resolvable:$true] %s17_s20  ;;  %s40_s22 = int_to_ptr.vmem [resolvable:$true] %s39_s22 }
  0x10   :  { %s651_s23 = scalar_lea.vmem %s18_s20, 128  ;;  %p656_p6 = scmp.lt.s32.totalorder %s18_s20, %s18_s20 }
  0x11   :  { %p652_p5 = scmp.ne.s32.totalorder %s18_s20, %s651_s23  ;;  %p657_p7 = scmp.lt.s32.totalorder %s651_s23, %s651_s23 }
  0x13   :  { %p658_p8 = por %p657_p7, %p656_p6 }
  0x15   :  { %p659_p9 = pnand %p658_p8, %p652_p5 }
  0x17   :  { %662 = shalt.err (!%p659_p9)
}
  0x18   :  { %20 = dma.hbm_to_vmem [thread:$0]  %s789_s0, 128, %s18_s20, [#allocation3]  }
  0x19   :  { %s671_s26 = scalar_lea.vmem %s40_s22, 64  ;;  %p676_p11 = scmp.lt.s32.totalorder %s40_s22, %s40_s22 }
  0x1a   :  { %p672_p10 = scmp.ne.s32.totalorder %s40_s22, %s671_s26  ;;  %p677_p12 = scmp.lt.s32.totalorder %s671_s26, %s671_s26 }
  0x1c   :  { %p678_p13 = por %p677_p12, %p676_p11 }
  0x1e   :  { %p679_p0 = pnand %p678_p13, %p672_p10 }
  0x20   :  { %682 = shalt.err (!%p679_p0)
}
  0x21   :  { %42 = dma.hbm_to_vmem [thread:$0]  %s791_s2, 64, %s40_s22, [#allocation6]  }
  0x22   :  { %703 = dma.done.wait [#allocation3], 128  }
  0x23   :  { %704 = vsyncadd [#allocation3], 4294967168 }
  0x24   :  { %705 = dma.done.wait [#allocation6], 3136  }
  0x25   :  { %706 = vsyncadd [#allocation6], 4294964160  ;;  %v714_v0 = vmov 0.0   ;;  %vm715_vm0 = vmmov 0   ;;  %v599_v1 = vld [vmem:[#allocation5 + $0x38] sm:$0xff]   ;;  %v600_v2 = vld [vmem:[#allocation5 + $0x30] sm:$0xff]  }
  0x26   :  { %511 = vmatprep.subr.bf16.mxu0 %v714_v0  ;;  %527 = vmatprep.mubr.msk.bf16.mxu0 %vm715_vm0, %v714_v0  ;;  %v601_v3 = vld [vmem:[#allocation5 + $0x28] sm:$0xff]   ;;  %v607_v4 = vld [vmem:[#allocation5 + $0x78] sm:$0xff]   ;;  %v602_v5 = vld [vmem:[#allocation5 + $0x20] sm:$0xff]   ;;  %s716_s0 = smov [#allocation8]  }
  0x27   :  { %531 = vmatprep.subr.bf16.mxu1 %v714_v0  ;;  %547 = vmatprep.mubr.msk.bf16.mxu1 %vm715_vm0, %v714_v0  ;;  %v608_v6 = vld [vmem:[#allocation5 + $0x70] sm:$0xff]   ;;  %v603_v7 = vld [vmem:[#allocation5 + $0x18] sm:$0xff]   ;;  %v609_v8 = vld [vmem:[#allocation5 + $0x68] sm:$0xff]   ;;  %s438_s2 = sshll.u32 %s716_s0, 4  ;;  %s439_s2 = int_to_ptr.vmem [resolvable:$true] %s438_s2 }
  0x28   :  { %512 = vmatpush3.bf16.msra.mxu0 %v599_v1  ;;  %532 = vmatpush3.bf16.msra.mxu1 %v607_v4  ;;  %v604_v9 = vld [vmem:[#allocation5 + $0x10] sm:$0xff]   ;;  %v610_v10 = vld [vmem:[#allocation5 + $0x60] sm:$0xff]   ;;  %v605_v11 = vld [vmem:[#allocation5 + $0x8] sm:$0xff]   ;;  %s683_s28 = scalar_lea.vmem %s439_s2, 128  ;;  %p688_p2 = scmp.lt.s32.totalorder %s439_s2, %s439_s2 }
  0x29   :  { %513 = vmatprep.subr.bf16.mxu0 %v714_v0  ;;  %533 = vmatprep.subr.bf16.mxu1 %v714_v0  ;;  %v611_v12 = vld [vmem:[#allocation5 + $0x58] sm:$0xff]   ;;  %v606_v13 = vld [vmem:[#allocation5] sm:$0xff]   ;;  %v612_v15 = vld [vmem:[#allocation5 + $0x50] sm:$0xff]   ;;  %p684_p1 = scmp.ne.s32.totalorder %s439_s2, %s683_s28  ;;  %p689_p3 = scmp.lt.s32.totalorder %s683_s28, %s683_s28 }
  0x2a   :  { %v53_v14 = vld [vmem:[#allocation2] sm:$0xff]  ;;  %v613_v17 = vld [vmem:[#allocation5 + $0x48] sm:$0xff]   ;;  %v614_v18 = vld [vmem:[#allocation5 + $0x40] sm:$0xff]  }
  0x2b   :  { %v71_v16 = vpack.c.bf16 %v53_v14, %v53_v14  ;;  %v448_v19 = vld [vmem:[#allocation7] ss:$0 sm:$0xff]  ;;  %v615_v26 = vld [vmem:[#allocation5 + $0xb8] sm:$0xff]   ;;  %v616_v27 = vld [vmem:[#allocation5 + $0xb0] sm:$0xff]   ;;  %p690_p4 = por %p689_p3, %p688_p2 }
  0x2c   :  { %514 = vmatpush3.bf16.msra.mxu0 %v600_v2  ;;  %534 = vmatpush3.bf16.msra.mxu1 %v608_v6  ;;  %v617_v28 = vld [vmem:[#allocation5 + $0xa8] sm:$0xff]   ;;  %v618_v29 = vld [vmem:[#allocation5 + $0xa0] sm:$0xff]   ;;  %v619_v30 = vld [vmem:[#allocation5 + $0x98] sm:$0xff]  }
  0x2d   :  { %515 = vmatprep.subr.bf16.mxu0 %v714_v0  ;;  %535 = vmatprep.subr.bf16.mxu1 %v714_v0  ;;  %v620_v31 = vld [vmem:[#allocation5 + $0x90] sm:$0xff]   ;;  %v457_v32 = vld [vmem:[#allocation7 + $0x1] ss:$0 sm:$0xff]  ;;  %v621_v41 = vld [vmem:[#allocation5 + $0x88] sm:$0xff]   ;;  %p691_p5 = pnand %p690_p4, %p684_p1 }
  0x2e   :  { %v622_v42 = vld [vmem:[#allocation5 + $0x80] sm:$0xff]  }
  0x2f   :  { %v466_v51 = vld [vmem:[#allocation7 + $0x2] ss:$0 sm:$0xff] }
  0x30   :  { %516 = vmatpush3.bf16.msra.mxu0 %v601_v3  ;;  %536 = vmatpush3.bf16.msra.mxu1 %v609_v8 }
  0x31   :  { %517 = vmatprep.subr.bf16.mxu0 %v714_v0  ;;  %537 = vmatprep.subr.bf16.mxu1 %v714_v0 }
  0x34   :  { %518 = vmatpush3.bf16.msra.mxu0 %v602_v5  ;;  %538 = vmatpush3.bf16.msra.mxu1 %v610_v10 }
  0x35   :  { %519 = vmatprep.subr.bf16.mxu0 %v714_v0  ;;  %539 = vmatprep.subr.bf16.mxu1 %v714_v0 }
  0x38   :  { %520 = vmatpush3.bf16.msra.mxu0 %v603_v7  ;;  %540 = vmatpush3.bf16.msra.mxu1 %v611_v12 }
  0x39   :  { %521 = vmatprep.subr.bf16.mxu0 %v714_v0  ;;  %541 = vmatprep.subr.bf16.mxu1 %v714_v0 }
  0x3c   :  { %522 = vmatpush3.bf16.msra.mxu0 %v604_v9  ;;  %542 = vmatpush3.bf16.msra.mxu1 %v612_v15 }
  0x3d   :  { %523 = vmatprep.subr.bf16.mxu0 %v714_v0  ;;  %543 = vmatprep.subr.bf16.mxu1 %v714_v0 }
  0x40   :  { %524 = vmatpush3.bf16.msra.mxu0 %v605_v11  ;;  %544 = vmatpush3.bf16.msra.mxu1 %v613_v17 }
  0x41   :  { %525 = vmatprep.subr.bf16.mxu0 %v714_v0  ;;  %545 = vmatprep.subr.bf16.mxu1 %v714_v0 }
  0x44   :  { %526 = vmatpush3.bf16.msra.mxu0 %v606_v13  ;;  %546 = vmatpush3.bf16.msra.mxu1 %v614_v18 }
  0x45   :  { %551 = vmatprep.subr.bf16.mxu0 %v714_v0  ;;  %571 = vmatprep.subr.bf16.mxu1 %v714_v0 }
  0x47   :  { %528 = vmatmul.mubr.bf16.vlgmr.msra.gmra.mxu0 %v71_v16 }
  0x48   :  { %552 = vmatpush3.bf16.msra.mxu0 %v607_v4  ;;  %567 = vmatprep.mubr.msk.bf16.mxu0 %vm715_vm0, %v714_v0 }
  0x49   :  { %553 = vmatprep.subr.bf16.mxu0 %v714_v0 }
  0x4c   :  { %554 = vmatpush3.bf16.msra.mxu0 %v608_v6 }
  0x4d   :  { %555 = vmatprep.subr.bf16.mxu0 %v714_v0 }
  0x50   :  { %556 = vmatpush3.bf16.msra.mxu0 %v609_v8 }
  0x51   :  { %557 = vmatprep.subr.bf16.mxu0 %v714_v0 }
  0x54   :  { %558 = vmatpush3.bf16.msra.mxu0 %v610_v10 }
  0x55   :  { %559 = vmatprep.subr.bf16.mxu0 %v714_v0 }
  0x58   :  { %560 = vmatpush3.bf16.msra.mxu0 %v611_v12 }
  0x59   :  { %561 = vmatprep.subr.bf16.mxu0 %v714_v0 }
  0x5c   :  { %562 = vmatpush3.bf16.msra.mxu0 %v612_v15 }
  0x5d   :  { %563 = vmatprep.subr.bf16.mxu0 %v714_v0 }
  0x60   :  { %564 = vmatpush3.bf16.msra.mxu0 %v613_v17 }
  0x61   :  { %565 = vmatprep.subr.bf16.mxu0 %v714_v0 }
  0x64   :  { %566 = vmatpush3.bf16.msra.mxu0 %v614_v18 }
 0x107   :  { %v158_v20 = vpop.f32.mrf.mxu0 }
 0x108   :  { %v159_v21 = vadd.f32 %v448_v19, %v158_v20 }
 0x109   :  { %v529_v22 = vpop.f32.mrf.mxu0 }
 0x10a   :  { %v182_v23 = vpack.c.bf16 %v159_v21, %v159_v21 }
 0x10b   :  { %v161_v24 = vpop.f32.mrf.mxu0 }
 0x10c   :  { %548 = vmatmul.mubr.bf16.vlgmr.msra.gmra.mxu1 %v182_v23 }
 0x10d   :  { %v530_v25 = vpop.f32.mrf.mxu0  ;;  %587 = vmatprep.mubr.msk.bf16.mxu1 %vm715_vm0, %v714_v0  ;;  %572 = vmatpush3.bf16.msra.mxu1 %v615_v26 }
 0x10e   :  { %573 = vmatprep.subr.bf16.mxu1 %v714_v0 }
 0x111   :  { %574 = vmatpush3.bf16.msra.mxu1 %v616_v27 }
 0x112   :  { %575 = vmatprep.subr.bf16.mxu1 %v714_v0 }
 0x115   :  { %576 = vmatpush3.bf16.msra.mxu1 %v617_v28 }
 0x116   :  { %577 = vmatprep.subr.bf16.mxu1 %v714_v0 }
 0x119   :  { %578 = vmatpush3.bf16.msra.mxu1 %v618_v29 }
 0x11a   :  { %579 = vmatprep.subr.bf16.mxu1 %v714_v0 }
 0x11d   :  { %580 = vmatpush3.bf16.msra.mxu1 %v619_v30 }
 0x11e   :  { %581 = vmatprep.subr.bf16.mxu1 %v714_v0 }
 0x121   :  { %582 = vmatpush3.bf16.msra.mxu1 %v620_v31 }
 0x122   :  { %583 = vmatprep.subr.bf16.mxu1 %v714_v0 }
 0x125   :  { %584 = vmatpush3.bf16.msra.mxu1 %v621_v41 }
 0x126   :  { %585 = vmatprep.subr.bf16.mxu1 %v714_v0 }
 0x129   :  { %586 = vmatpush3.bf16.msra.mxu1 %v622_v42 }
 0x1cc   :  { %v269_v33 = vpop.f32.mrf.mxu1 }
 0x1cd   :  { %v270_v34 = vadd.f32 %v457_v32, %v269_v33 }
 0x1ce   :  { %v549_v35 = vpop.f32.mrf.mxu1 }
 0x1cf   :  { %v275_v36 = vmax.f32 %v270_v34, 0.0 }
 0x1d0   :  { %v272_v37 = vpop.f32.mrf.mxu1 }
 0x1d1   :  { %v276_v38 = vadd.f32 %v275_v36, %v159_v21 }
 0x1d2   :  { %v550_v39 = vpop.f32.mrf.mxu1 }
 0x1d3   :  { %v277_v40 = vpack.c.bf16 %v276_v38, %v276_v38 }
 0x1d5   :  { %568 = vmatmul.mubr.bf16.vlgmr.msra.gmra.mxu0 %v277_v40 }
 0x295   :  { %v312_v43 = vpop.f32.mrf.mxu0 }
 0x296   :  { %v313_v44 = vadd.f32 %v457_v32, %v312_v43 }
 0x297   :  { %v569_v45 = vpop.f32.mrf.mxu0 }
 0x298   :  { %v318_v46 = vmax.f32 %v313_v44, 0.0 }
 0x299   :  { %v315_v47 = vpop.f32.mrf.mxu0 }
 0x29a   :  { %v319_v48 = vadd.f32 %v318_v46, %v276_v38 }
 0x29b   :  { %v570_v49 = vpop.f32.mrf.mxu0 }
 0x29c   :  { %v338_v50 = vpack.c.bf16 %v319_v48, %v319_v48 }
 0x29e   :  { %588 = vmatmul.mubr.bf16.vlgmr.msra.gmra.mxu1 %v338_v50 }
 0x35e   :  { %v425_v52 = vpop.f32.mrf.mxu1 }
 0x35f   :  { %v426_v53 = vadd.f32 %v466_v51, %v425_v52 }
 0x360   :  { %v589_v54 = vpop.f32.mrf.mxu1 }
 0x361   :  { %431 = vst [vmem:[#allocation8] sm:$0xff] %v426_v53 }
 0x362   :  { %v428_v55 = vpop.f32.mrf.mxu1 }
 0x363   :  { %694 = shalt.err (!%p691_p5)
}
 0x364   :  { %441 = dma.vmem_to_hbm [thread:$0]  %s439_s2, 128, %s792_s3, [#allocation4]   ;;  %v590_v56 = vpop.f32.mrf.mxu1 }
 0x365   :  { %707 = dma.done.wait [#allocation4], 128  }
 0x366   :  { %708 = vsyncadd [#allocation4], 4294967168 }
 0x367   :  { %445 = vsyncpa [#allocation3], 1 }
 0x368   :  { %446 = vsyncpa [#allocation6], 1 }
 0x369   :  { %447 = vsyncpa [#allocation4], 1 }

</bundles_post_ra>
